<compile_context>
chip_gen: v7x
topology: tpu7x:2x2x1
jax: 0.10.0
libtpu: 0.0.40
codegen_flags: <defaults>
</compile_context>

<pallas_src>
import jax
import jax.numpy as jnp
from jax import lax
from jax.experimental import pallas as pl
from jax.experimental.pallas import tpu as pltpu

EPS = 1e-5


def _softmax_norm_kernel(nb_ref, x_ref, o_ref):
    # nb_ref: (1, 1) SMEM scalar holding the `normbound` parameter value
    # x_ref : (TR, D) VMEM tile of rows
    # o_ref : (TR, D) VMEM output tile
    x = x_ref[...].astype(jnp.float32)

    # torch.where(torch.isinf(input), 0, input)
    x = jnp.where(jnp.isinf(x), jnp.zeros_like(x), x)

    d = x.shape[-1]

    # Fused stats pass: row max + sums on the shifted values.
    mx = jnp.max(x, axis=-1, keepdims=True)
    y = x - mx                                   # reused for variance AND exp

    # Unbiased variance; shift-invariant, so computing it on y avoids the
    # catastrophic cancellation of the raw single-pass formula.
    s1 = jnp.sum(y, axis=-1, keepdims=True)
    s2 = jnp.sum(y * y, axis=-1, keepdims=True)
    var = (s2 - s1 * s1 * (1.0 / d)) * (1.0 / max(d - 1, 1))
    var = jnp.maximum(var, 0.0)                  # clamp tiny fp negatives

    rate = var + EPS
    # mirrors the torch.isnan(softmaxrate) -> 1 branch
    rate = jnp.where(jnp.isnan(rate), jnp.ones_like(rate), rate)

    nb = nb_ref[0, 0]
    # pow(normbound**2 * (1/rate), 0.5) == |normbound| * rsqrt(rate)   (>= 0)
    scale = jnp.abs(nb) * lax.rsqrt(rate)

    # scale >= 0  =>  max(scale * x) = scale * max(x), so exp(scale * y) is the
    # numerically-stable softmax numerator directly.
    e = jnp.exp(scale * y)
    denom = jnp.sum(e, axis=-1, keepdims=True)
    o_ref[...] = (e / denom).astype(o_ref.dtype)   # exact division


def _round_up(n, m):
    return ((n + m - 1) // m) * m


def _tpu_generation():
    """Best-effort chip generation (7 / 6 / 5 / None)."""
    try:
        kind = jax.devices()[0].device_kind.lower()
    except Exception:
        return None
    for gen in (7, 6, 5):
        if f"v{gen}" in kind:
            return gen
    return None


def _pick_row_tile(rows, d, itemsize, gen):
    """Sublane-aligned row tile: VMEM-budgeted with enough grid steps to pipeline."""
    sub = max(8, 32 // max(itemsize, 1))          # 8 (f32), 16 (bf16), 32 (int8)
    if gen == 7:        # 2 TensorCores, 64 MiB VMEM per TC
        budget, row_cap, target_steps = 18 << 20, 2048, 8
    else:               # v5e / v6e: 1 TC, 128 MiB VMEM (also the safe default)
        budget, row_cap, target_steps = 40 << 20, 8192, 4

    # per step: double-buffered in+out tiles + ~3 (TR, D) f32 temps (x, y, e)
    bytes_per_row = d * (4 * itemsize + 3 * 4)
    tr = min(row_cap, max(budget // max(bytes_per_row, 1), sub))
    tr = max(sub, (tr // sub) * sub)

    # prefer >= target_steps pipeline steps, but never shrink below ~256 rows
    tr_steps = _round_up(max(-(-rows // target_steps), 1), sub)
    tr = min(tr, max(tr_steps, min(256, tr)))
    tr = max(sub, (tr // sub) * sub)

    # never bigger than the (sublane-rounded) row count
    tr = min(tr, _round_up(rows, sub))

    if gen == 7:
        # keep the step count even so both TensorCores get equal work
        steps = -(-rows // tr)
        if steps > 1 and steps % 2 == 1:
            tr = max(sub, _round_up(-(-rows // (steps + 1)), sub))
    return tr


def softmax_norm(x, normbound, *, row_tile=None):
    """x: [..., D]; Softmax_norm over the last axis. normbound: scalar parameter."""
    orig_shape = x.shape
    d = orig_shape[-1]
    rows = 1
    for s in orig_shape[:-1]:
        rows *= s
    x2 = x.reshape(rows, d)                       # reshape is free; no pad/slice

    gen = _tpu_generation()
    itemsize = jnp.dtype(x.dtype).itemsize
    if row_tile is None:
        row_tile = _pick_row_tile(rows, d, itemsize, gen)
    grid = pl.cdiv(rows, row_tile)                # ragged last block masked by Pallas

    nb = jnp.asarray(normbound, jnp.float32).reshape(1, 1)
    vmem_limit = (48 << 20) if gen == 7 else (64 << 20)

    # TODO(synk): if D < 128 mattered in production, fold 128//D rows into the
    # lane axis for a lane-dense output; real BERT scores have D = seq_len
    # (multiple of 128), so it is not done here.
    out2 = pl.pallas_call(
        _softmax_norm_kernel,
        out_shape=jax.ShapeDtypeStruct((rows, d), x.dtype),
        grid_spec=pltpu.PrefetchScalarGridSpec(
            num_scalar_prefetch=0,
            grid=(grid,),
            in_specs=[
                pl.BlockSpec(memory_space=pltpu.SMEM),           # normbound scalar
                pl.BlockSpec((row_tile, d), lambda i: (i, 0)),   # input row tile
            ],
            out_specs=pl.BlockSpec((row_tile, d), lambda i: (i, 0)),
        ),
        compiler_params=pltpu.CompilerParams(
            dimension_semantics=("parallel",),
            vmem_limit_bytes=vmem_limit,
        ),
    )(nb, x2)

    return out2.reshape(orig_shape)


def _softmax_norm_ref(x, normbound):
    """Pure-JAX reference mirroring the PyTorch forward."""
    x = jnp.where(jnp.isinf(x), jnp.zeros_like(x), x)
    var = jnp.var(x.astype(jnp.float32), axis=-1, ddof=1, keepdims=True)
    rate = var + EPS
    rate = jnp.where(jnp.isnan(rate), jnp.ones_like(rate), rate)
    nb = jnp.asarray(normbound, jnp.float32).reshape(())
    scale = jnp.sqrt(nb * nb / rate)
    return jax.nn.softmax(scale * x.astype(jnp.float32), axis=-1).astype(x.dtype)


if __name__ == "__main__":
    key = jax.random.PRNGKey(0)
    k_param, k_x, k_x2 = jax.random.split(key, 3)

    # Parameter init mirrors nn.Parameter(torch.randn([1]) ** 2)
    normbound = jax.random.normal(k_param, (1,), jnp.float32) ** 2

    # --- Test 1: attention-score-like input [B, H, S, D], softmax over D ----
    B, H, S, D = 2, 4, 8, 32
    x = jax.random.normal(k_x, (B, H, S, D), jnp.float32)
    x = x.at[0, 0, 0, 0].set(jnp.inf)            # exercise the isinf -> 0 branch

    out = jax.block_until_ready(softmax_norm(x, normbound))
    assert out.shape == x.shape

    row_sums = jnp.sum(out, axis=-1)
    assert jnp.allclose(row_sums, jnp.ones_like(row_sums), atol=1e-4), float(
        jnp.max(jnp.abs(row_sums - 1.0)))

    ref = _softmax_norm_ref(x, normbound)
    assert jnp.allclose(out, ref, atol=2e-3), float(jnp.max(jnp.abs(out - ref)))

    # --- Test 2: ragged grid (rows not a multiple of the tile) + offset ----
    x2 = jax.random.normal(k_x2, (2, 3, 5, 32), jnp.float32) + 100.0  # 30 rows
    out2 = jax.block_until_ready(softmax_norm(x2, normbound, row_tile=8))
    ref2 = _softmax_norm_ref(x2, normbound)
    assert out2.shape == x2.shape
    assert jnp.allclose(out2, ref2, atol=2e-3), float(jnp.max(jnp.abs(out2 - ref2)))

    print("KERNEL_OK")
</pallas_src>

<mosaic_0001>
module attributes {stable_mosaic.version = 11 : i64} {
  func.func @_softmax_norm_kernel(%arg0: i32, %arg1: memref<1x1xf32, #tpu.memory_space<smem>>, %arg2: memref<64x32xf32, #tpu.memory_space<vmem>>, %arg3: memref<64x32xf32, #tpu.memory_space<vmem>>) attributes {dimension_semantics = [#tpu.dimension_semantics<parallel>], iteration_bounds = array<i64: 1>, scalar_prefetch = 0 : i64, scratch_operands = 0 : i64, tpu.core_type = #tpu.core_type<tc>, window_params = [{transform_indices = @transform_0, window_bounds = array<i64: 1, 1>}, {transform_indices = @transform_1, window_bounds = array<i64: 64, 32>}, {transform_indices = @transform_2, window_bounds = array<i64: 64, 32>}]} {
    %c0 = arith.constant 0 : index
    %c0_0 = arith.constant 0 : index
    %0 = vector.load %arg2[%c0, %c0_0] : memref<64x32xf32, #tpu.memory_space<vmem>>, vector<64x32xf32>
    %1 = math.absf %0 : vector<64x32xf32>
    %cst = arith.constant 0x7F800000 : f32
    %2 = vector.broadcast %cst : f32 to vector<64x32xf32>
    %3 = arith.cmpf oeq, %1, %2 : vector<64x32xf32>
    %cst_1 = arith.constant 0.000000e+00 : f32
    %4 = vector.broadcast %cst_1 : f32 to vector<64x32xf32>
    %5 = arith.select %3, %4, %0 : vector<64x32xi1>, vector<64x32xf32>
    %cst_2 = arith.constant dense<0xFF800000> : vector<64xf32>
    %6 = vector.multi_reduction <maximumf>, %5, %cst_2 [1] : vector<64x32xf32> to vector<64xf32>
    %7 = vector.shape_cast %6 : vector<64xf32> to vector<64x1xf32>
    %8 = vector.broadcast %7 : vector<64x1xf32> to vector<64x32xf32>
    %9 = arith.subf %5, %8 : vector<64x32xf32>
    %cst_3 = arith.constant dense<0.000000e+00> : vector<64xf32>
    %10 = vector.multi_reduction <add>, %9, %cst_3 [1] : vector<64x32xf32> to vector<64xf32>
    %11 = vector.shape_cast %10 : vector<64xf32> to vector<64x1xf32>
    %12 = arith.mulf %9, %9 : vector<64x32xf32>
    %cst_4 = arith.constant dense<0.000000e+00> : vector<64xf32>
    %13 = vector.multi_reduction <add>, %12, %cst_4 [1] : vector<64x32xf32> to vector<64xf32>
    %14 = vector.shape_cast %13 : vector<64xf32> to vector<64x1xf32>
    %15 = arith.mulf %11, %11 : vector<64x1xf32>
    %cst_5 = arith.constant 3.125000e-02 : f32
    %16 = vector.broadcast %cst_5 : f32 to vector<64x1xf32>
    %17 = arith.mulf %15, %16 : vector<64x1xf32>
    %18 = arith.subf %14, %17 : vector<64x1xf32>
    %cst_6 = arith.constant 0.0322580636 : f32
    %19 = vector.broadcast %cst_6 : f32 to vector<64x1xf32>
    %20 = arith.mulf %18, %19 : vector<64x1xf32>
    %cst_7 = arith.constant 0.000000e+00 : f32
    %21 = vector.broadcast %cst_7 : f32 to vector<64x1xf32>
    %22 = arith.maximumf %20, %21 : vector<64x1xf32>
    %cst_8 = arith.constant 9.99999974E-6 : f32
    %23 = vector.broadcast %cst_8 : f32 to vector<64x1xf32>
    %24 = arith.addf %22, %23 : vector<64x1xf32>
    %25 = arith.cmpf one, %24, %24 : vector<64x1xf32>
    %cst_9 = arith.constant 1.000000e+00 : f32
    %26 = vector.broadcast %cst_9 : f32 to vector<64x1xf32>
    %27 = arith.select %25, %26, %24 : vector<64x1xi1>, vector<64x1xf32>
    %c0_10 = arith.constant 0 : index
    %c0_11 = arith.constant 0 : index
    %28 = memref.load %arg1[%c0_10, %c0_11] : memref<1x1xf32, #tpu.memory_space<smem>>
    %29 = math.absf %28 : f32
    %30 = math.rsqrt %27 : vector<64x1xf32>
    %31 = vector.broadcast %29 : f32 to vector<64x1xf32>
    %32 = arith.mulf %31, %30 : vector<64x1xf32>
    %33 = vector.broadcast %32 : vector<64x1xf32> to vector<64x32xf32>
    %34 = arith.mulf %33, %9 : vector<64x32xf32>
    %35 = math.exp %34 : vector<64x32xf32>
    %cst_12 = arith.constant dense<0.000000e+00> : vector<64xf32>
    %36 = vector.multi_reduction <add>, %35, %cst_12 [1] : vector<64x32xf32> to vector<64xf32>
    %37 = vector.shape_cast %36 : vector<64xf32> to vector<64x1xf32>
    %38 = vector.broadcast %37 : vector<64x1xf32> to vector<64x32xf32>
    %39 = arith.divf %35, %38 : vector<64x32xf32>
    %c0_13 = arith.constant 0 : index
    %c0_14 = arith.constant 0 : index
    %40 = vector.load %arg3[%c0_13, %c0_14] : memref<64x32xf32, #tpu.memory_space<vmem>>, vector<64x32xf32>
    tpu.vector_store %arg3[%c0_13, %c0_14], %39 {strides = array<i32>} : memref<64x32xf32, #tpu.memory_space<vmem>>, vector<64x32xf32>,
    return
  }
  func.func @transform_0(%arg0: i32) -> (i32, i32) {
    %c0_i32 = arith.constant 0 : i32
    %c0_i32_0 = arith.constant 0 : i32
    %c0_i32_1 = arith.constant 0 : i32
    return %c0_i32, %c0_i32_0 : i32, i32
  }
  func.func @transform_1(%arg0: i32) -> (i32, i32) {
    %c0_i32 = arith.constant 0 : i32
    %c0_i32_0 = arith.constant 0 : i32
    return %arg0, %c0_i32 : i32, i32
  }
  func.func @transform_2(%arg0: i32) -> (i32, i32) {
    %c0_i32 = arith.constant 0 : i32
    %c0_i32_0 = arith.constant 0 : i32
    return %arg0, %c0_i32 : i32, i32
  }
}

</mosaic_0001>

<bundles_post_ra>
// kernel: tpu_custom_call.1
= control target key start
LH: loop header
LB: loop body
LE: loop exit
PB: predicated region body
PF: predicated region fallthrough
CT: control target
= control target key end

     0   :  { %8 = vsyncpa [#allocation4], 0  ;;  %s560_s0 = inlined_call_operand.<no memory space> [shape: f32[1,1], index: 0, kind: input, shape index: {}]   ;;  %s561_s1 = inlined_call_operand.hbm [shape: f32[64,32], index: 1, kind: input, shape index: {}]   ;;  %s562_s2 = inlined_call_operand.hbm [shape: f32[64,32], index: 2, kind: output, shape index: {}]  }
   0x1   :  { %9 = vsyncpa [#allocation5], 0  ;;  %s420_s9 = smov [#allocation3]   ;;  %s372_s13 = scalar_lea.hbm %s561_s1, 1024 }
   0x2   :  { %s17_s10 = sshll.u32 %s420_s9, 4  ;;  %p373_p0 = scmp.ne.s32.totalorder %s561_s1, %s372_s13  ;;  %s18_s10 = int_to_ptr.vmem [resolvable:$true] %s17_s10 }
   0x3   :  { %p376_p1 = scmp.lt.u32.totalorder %s372_s13, %s561_s1 }
   0x5   :  { %p378_p2 = pnand %p376_p1, %p373_p0 }
   0x7   :  { %381 = shalt.err (!%p378_p2)
}
   0x8   :  { %s382_s18 = scalar_lea.vmem %s18_s10, 1024  ;;  %p387_p4 = scmp.lt.s32.totalorder %s18_s10, %s18_s10 }
   0x9   :  { %p383_p3 = scmp.ne.s32.totalorder %s18_s10, %s382_s18  ;;  %p388_p5 = scmp.lt.s32.totalorder %s382_s18, %s382_s18 }
   0xb   :  { %p389_p6 = por %p388_p5, %p387_p4 }
   0xd   :  { %p390_p7 = pnand %p389_p6, %p383_p3 }
   0xf   :  { %393 = shalt.err (!%p390_p7)
}
  0x10   :  { %s421_s19 = smov 128   ;;  %s422_s20 = smov 8  }
  0x11   :  { %23 = dma.hbm_to_vmem [thread:$0]  %s561_s1, 1024, %s18_s10, [#allocation4], %s421_s19, %s421_s19, %s422_s20  }
  0x12   :  { %416 = dma.done.wait [#allocation4], 1024  }
  0x13   :  { %417 = vsyncadd [#allocation4], 4294966272  ;;  %v27_v0 = vld [vmem:[#allocation3] sm:$0xff]  ;;  %v29_v1 = vld [vmem:[#allocation3 + $0x10] sm:$0xff]  ;;  %vm59_vm0 = vcmask 261120  }
  0x14   :  { %v28_v2 = vld [vmem:[#allocation3 + $0x8] sm:$0xff]  ;;  %v35_v3 = vand.u32 2147483647, %v27_v0  ;;  %v37_v4 = vand.u32 2147483647, %v29_v1  ;;  %v30_v6 = vld [vmem:[#allocation3 + $0x18] sm:$0xff] }
  0x15   :  { %v36_v5 = vand.u32 2147483647, %v28_v2  ;;  %v31_v7 = vld [vmem:[#allocation3 + $0x20] sm:$0xff]  ;;  %v32_v8 = vld [vmem:[#allocation3 + $0x28] sm:$0xff]  ;;  %v38_v9 = vand.u32 2147483647, %v30_v6 }
  0x16   :  { %vm43_vm1 = vcmp.eq.f32.partialorder %v35_v3, inf  ;;  %vm45_vm2 = vcmp.eq.f32.partialorder %v37_v4, inf  ;;  %v33_v10 = vld [vmem:[#allocation3 + $0x30] sm:$0xff]  ;;  %v39_v14 = vand.u32 2147483647, %v31_v7  ;;  %v34_v15 = vld [vmem:[#allocation3 + $0x38] sm:$0xff] }
  0x17   :  { %vm44_vm3 = vcmp.eq.f32.partialorder %v36_v5, inf  ;;  %v51_v11 = vsel %vm43_vm1, 0.0, %v27_v0  ;;  %v53_v12 = vsel %vm45_vm2, 0.0, %v29_v1  ;;  %vm46_vm4 = vcmp.eq.f32.partialorder %v38_v9, inf  ;;  %s213_s24 = sand.u32 2147483647, %s560_s0 }
  0x18   :  { %v52_v13 = vsel %vm44_vm3, 0.0, %v28_v2  ;;  %v60_v16 = vsel %vm59_vm0, %v51_v11, -inf  ;;  %v66_v17 = vsel %vm59_vm0, %v53_v12, -inf  ;;  %v54_v18 = vsel %vm46_vm4, 0.0, %v30_v6  ;;  %s423_s0 = smov [#allocation6]  }
  0x19   :  { %61 = vmax.xlane.f32.xlu0 %v60_v16  ;;  %67 = vmax.xlane.f32.xlu1 %v66_v17  ;;  %vm47_vm5 = vcmp.eq.f32.partialorder %v39_v14, inf  ;;  %v40_v19 = vand.u32 2147483647, %v32_v8  ;;  %v41_v20 = vand.u32 2147483647, %v33_v10  ;;  %v63_v21 = vsel %vm59_vm0, %v52_v13, -inf }
  0x1a   :  { %v69_v22 = vsel %vm59_vm0, %v54_v18, -inf  ;;  %v42_v23 = vand.u32 2147483647, %v34_v15  ;;  %v55_v24 = vsel %vm47_vm5, 0.0, %v31_v7  ;;  %s308_s25 = sshll.u32 %s423_s0, 4  ;;  %s309_s25 = int_to_ptr.vmem [resolvable:$true] %s308_s25 }
  0x1b   :  { %vm48_vm6 = vcmp.eq.f32.partialorder %v40_v19, inf  ;;  %vm49_vm7 = vcmp.eq.f32.partialorder %v41_v20, inf  ;;  %v72_v26 = vsel %vm59_vm0, %v55_v24, -inf  ;;  %s394_s26 = scalar_lea.vmem %s309_s25, 1024  ;;  %p399_p9 = scmp.lt.s32.totalorder %s309_s25, %s309_s25 }
  0x1c   :  { %v56_v25 = vsel %vm48_vm6, 0.0, %v32_v8  ;;  %vm50_vm8 = vcmp.eq.f32.partialorder %v42_v23, inf  ;;  %v57_v28 = vsel %vm49_vm7, 0.0, %v33_v10  ;;  %p395_p8 = scmp.ne.s32.totalorder %s309_s25, %s394_s26  ;;  %p400_p10 = scmp.lt.s32.totalorder %s394_s26, %s394_s26 }
  0x1d   :  { %64 = vmax.xlane.f32.xlu0 %v63_v21  ;;  %70 = vmax.xlane.f32.xlu1 %v69_v22  ;;  %v75_v27 = vsel %vm59_vm0, %v56_v25, -inf  ;;  %v58_v29 = vsel %vm50_vm8, 0.0, %v34_v15  ;;  %v78_v30 = vsel %vm59_vm0, %v57_v28, -inf }
  0x1e   :  { %v81_v31 = vsel %vm59_vm0, %v58_v29, -inf  ;;  %p401_p11 = por %p400_p10, %p399_p9 }
  0x20   :  { %p402_p12 = pnand %p401_p11, %p395_p8 }
  0x21   :  { %73 = vmax.xlane.f32.xlu0 %v72_v26  ;;  %76 = vmax.xlane.f32.xlu1 %v75_v27 }
  0x25   :  { %79 = vmax.xlane.f32.xlu0 %v78_v30  ;;  %82 = vmax.xlane.f32.xlu1 %v81_v31 }
  0xa6   :  { %v62_v32 = vpop.xlane.xlu0 %61  ;;  %v68_v33 = vpop.xlane.xlu1 %67 }
  0xa7   :  { %v462_v34 = vsub.f32 %v51_v11, %v62_v32  ;;  %v464_v35 = vsub.f32 %v53_v12, %v68_v33 }
  0xa9   :  { %v92_v36 = vsel %vm59_vm0, %v462_v34, 0.0  ;;  %v98_v41 = vsel %vm59_vm0, %v464_v35, 0.0  ;;  %v116_v55 = vmul.f32 %v462_v34, %v462_v34  ;;  %v118_v59 = vmul.f32 %v464_v35, %v464_v35 }
  0xaa   :  { %93 = vadd.xlane.f32.xlu0 %v92_v36  ;;  %v65_v37 = vpop.xlane.xlu0 %64  ;;  %v71_v38 = vpop.xlane.xlu1 %70 }
  0xab   :  { %v468_v39 = vsub.f32 %v52_v13, %v65_v37  ;;  %v470_v40 = vsub.f32 %v54_v18, %v71_v38  ;;  %v124_v57 = vsel %vm59_vm0, %v116_v55, 0.0  ;;  %v130_v61 = vsel %vm59_vm0, %v118_v59, 0.0 }
  0xad   :  { %v95_v42 = vsel %vm59_vm0, %v468_v39, 0.0  ;;  %v101_v47 = vsel %vm59_vm0, %v470_v40, 0.0  ;;  %v117_v58 = vmul.f32 %v468_v39, %v468_v39  ;;  %v119_v62 = vmul.f32 %v470_v40, %v470_v40 }
  0xae   :  { %99 = vadd.xlane.f32.xlu0 %v98_v41  ;;  %96 = vadd.xlane.f32.xlu1 %v95_v42  ;;  %v74_v43 = vpop.xlane.xlu0 %73  ;;  %v77_v44 = vpop.xlane.xlu1 %76 }
  0xaf   :  { %v476_v45 = vsub.f32 %v55_v24, %v74_v43  ;;  %v478_v46 = vsub.f32 %v56_v25, %v77_v44  ;;  %v127_v60 = vsel %vm59_vm0, %v117_v58, 0.0  ;;  %v133_v0 = vsel %vm59_vm0, %v119_v62, 0.0 }
  0xb1   :  { %v104_v48 = vsel %vm59_vm0, %v476_v45, 0.0  ;;  %v107_v53 = vsel %vm59_vm0, %v478_v46, 0.0  ;;  %v120_v63 = vmul.f32 %v476_v45, %v476_v45  ;;  %v121_v2 = vmul.f32 %v478_v46, %v478_v46 }
  0xb2   :  { %102 = vadd.xlane.f32.xlu1 %v101_v47  ;;  %105 = vadd.xlane.f32.xlu0 %v104_v48  ;;  %v80_v49 = vpop.xlane.xlu0 %79  ;;  %v83_v50 = vpop.xlane.xlu1 %82 }
  0xb3   :  { %v484_v51 = vsub.f32 %v57_v28, %v80_v49  ;;  %v486_v52 = vsub.f32 %v58_v29, %v83_v50  ;;  %v136_v1 = vsel %vm59_vm0, %v120_v63, 0.0  ;;  %v139_v4 = vsel %vm59_vm0, %v121_v2, 0.0 }
  0xb5   :  { %v110_v54 = vsel %vm59_vm0, %v484_v51, 0.0  ;;  %v113_v56 = vsel %vm59_vm0, %v486_v52, 0.0  ;;  %v122_v3 = vmul.f32 %v484_v51, %v484_v51  ;;  %v123_v6 = vmul.f32 %v486_v52, %v486_v52 }
  0xb6   :  { %108 = vadd.xlane.f32.xlu1 %v107_v53  ;;  %111 = vadd.xlane.f32.xlu0 %v110_v54 }
  0xb7   :  { %v142_v5 = vsel %vm59_vm0, %v122_v3, 0.0  ;;  %v145_v7 = vsel %vm59_vm0, %v123_v6, 0.0 }
  0xba   :  { %114 = vadd.xlane.f32.xlu1 %v113_v56  ;;  %125 = vadd.xlane.f32.xlu0 %v124_v57 }
  0xbe   :  { %128 = vadd.xlane.f32.xlu1 %v127_v60  ;;  %131 = vadd.xlane.f32.xlu0 %v130_v61 }
  0xc2   :  { %134 = vadd.xlane.f32.xlu1 %v133_v0  ;;  %137 = vadd.xlane.f32.xlu0 %v136_v1 }
  0xc6   :  { %140 = vadd.xlane.f32.xlu1 %v139_v4  ;;  %143 = vadd.xlane.f32.xlu0 %v142_v5 }
  0xca   :  { %146 = vadd.xlane.f32.xlu1 %v145_v7 }
 0x137   :  { %v94_v8 = vpop.xlane.xlu0 %93 }
 0x138   :  { %v148_v13 = vmul.f32 %v94_v8, %v94_v8 }
 0x13a   :  { %v156_v16 = vmul.f32 0.03125, %v148_v13 }
 0x13b   :  { %v97_v9 = vpop.xlane.xlu1 %96  ;;  %v100_v10 = vpop.xlane.xlu0 %99 }
 0x13c   :  { %v149_v17 = vmul.f32 %v97_v9, %v97_v9  ;;  %v150_v18 = vmul.f32 %v100_v10, %v100_v10 }
 0x13e   :  { %v157_v23 = vmul.f32 0.03125, %v149_v17  ;;  %v158_v24 = vmul.f32 0.03125, %v150_v18 }
 0x13f   :  { %v103_v11 = vpop.xlane.xlu1 %102  ;;  %v106_v12 = vpop.xlane.xlu0 %105 }
 0x140   :  { %v151_v22 = vmul.f32 %v103_v11, %v103_v11  ;;  %v152_v26 = vmul.f32 %v106_v12, %v106_v12 }
 0x142   :  { %v159_v32 = vmul.f32 0.03125, %v151_v22  ;;  %v160_v41 = vmul.f32 0.03125, %v152_v26 }
 0x143   :  { %v109_v14 = vpop.xlane.xlu1 %108  ;;  %v112_v15 = vpop.xlane.xlu0 %111 }
 0x144   :  { %v153_v33 = vmul.f32 %v109_v14, %v109_v14  ;;  %v154_v42 = vmul.f32 %v112_v15, %v112_v15  ;;  %v222_v15 = vstv %s213_s24 }
 0x146   :  { %v161_v50 = vmul.f32 0.03125, %v153_v33  ;;  %v162_v59 = vmul.f32 0.03125, %v154_v42 }
 0x147   :  { %v115_v19 = vpop.xlane.xlu1 %114  ;;  %v126_v20 = vpop.xlane.xlu0 %125 }
 0x148   :  { %v164_v21 = vsub.f32 %v126_v20, %v156_v16  ;;  %v155_v53 = vmul.f32 %v115_v19, %v115_v19 }
 0x14a   :  { %v172_v25 = vmul.f32 0.032258064, %v164_v21  ;;  %v163_v5 = vmul.f32 0.03125, %v155_v53 }
 0x14b   :  { %v129_v27 = vpop.xlane.xlu1 %128  ;;  %v132_v28 = vpop.xlane.xlu0 %131 }
 0x14c   :  { %v180_v29 = vmax.f32 %v172_v25, 0.0  ;;  %v165_v30 = vsub.f32 %v129_v27, %v157_v23  ;;  %v166_v31 = vsub.f32 %v132_v28, %v158_v24 }
 0x14e   :  { %v188_v36 = vadd.f32 1e-05, %v180_v29  ;;  %v173_v37 = vmul.f32 0.032258064, %v165_v30  ;;  %v174_v38 = vmul.f32 0.032258064, %v166_v31 }
 0x14f   :  { %v135_v43 = vpop.xlane.xlu1 %134  ;;  %v138_v44 = vpop.xlane.xlu0 %137 }
 0x150   :  { %vm196_vm9 = vcmp.ne.f32.partialorder %v188_v36, %v188_v36  ;;  %v181_v47 = vmax.f32 %v173_v37, 0.0  ;;  %v182_v48 = vmax.f32 %v174_v38, 0.0  ;;  %v167_v49 = vsub.f32 %v135_v43, %v159_v32 }
 0x151   :  { %v204_v54 = vsel %vm196_vm9, 1.0, %v188_v36  ;;  %v168_v55 = vsub.f32 %v138_v44, %v160_v41 }
 0x152   :  { %324 = vrsqrt.f32 %v204_v54  ;;  %v189_v56 = vadd.f32 1e-05, %v181_v47  ;;  %v190_v57 = vadd.f32 1e-05, %v182_v48  ;;  %v175_v58 = vmul.f32 0.032258064, %v167_v49 }
 0x153   :  { %v176_v60 = vmul.f32 0.032258064, %v168_v55  ;;  %v141_v61 = vpop.xlane.xlu1 %140  ;;  %v144_v62 = vpop.xlane.xlu0 %143 }
 0x154   :  { %vm197_vm10 = vcmp.ne.f32.partialorder %v189_v56, %v189_v56  ;;  %vm198_vm11 = vcmp.ne.f32.partialorder %v190_v57, %v190_v57  ;;  %v183_v63 = vmax.f32 %v175_v58, 0.0  ;;  %v169_v0 = vsub.f32 %v141_v61, %v161_v50 }
 0x155   :  { %v205_v1 = vsel %vm197_vm10, 1.0, %v189_v56  ;;  %v206_v2 = vsel %vm198_vm11, 1.0, %v190_v57  ;;  %v184_v3 = vmax.f32 %v176_v60, 0.0  ;;  %v170_v4 = vsub.f32 %v144_v62, %v162_v59 }
 0x156   :  { %326 = vrsqrt.f32 %v205_v1  ;;  %v191_v6 = vadd.f32 1e-05, %v183_v63  ;;  %v177_v7 = vmul.f32 0.032258064, %v169_v0 }
 0x157   :  { %328 = vrsqrt.f32 %v206_v2  ;;  %v192_v8 = vadd.f32 1e-05, %v184_v3  ;;  %v178_v9 = vmul.f32 0.032258064, %v170_v4  ;;  %v147_v10 = vpop.xlane.xlu1 %146 }
 0x158   :  { %vm199_vm12 = vcmp.ne.f32.partialorder %v191_v6, %v191_v6  ;;  %v185_v11 = vmax.f32 %v177_v7, 0.0  ;;  %v171_v12 = vsub.f32 %v147_v10, %v163_v5 }
 0x159   :  { %v207_v13 = vsel %vm199_vm12, 1.0, %v191_v6  ;;  %vm200_vm13 = vcmp.ne.f32.partialorder %v192_v8, %v192_v8  ;;  %v186_v14 = vmax.f32 %v178_v9, 0.0 }
 0x15a   :  { %330 = vrsqrt.f32 %v207_v13  ;;  %v208_v16 = vsel %vm200_vm13, 1.0, %v192_v8  ;;  %v193_v17 = vadd.f32 1e-05, %v185_v11  ;;  %v179_v18 = vmul.f32 0.032258064, %v171_v12 }
 0x15b   :  { %332 = vrsqrt.f32 %v208_v16  ;;  %v194_v19 = vadd.f32 1e-05, %v186_v14 }
 0x15c   :  { %v325_v20 = vpop.eup %324  ;;  %vm201_vm14 = vcmp.ne.f32.partialorder %v193_v17, %v193_v17  ;;  %v187_v21 = vmax.f32 %v179_v18, 0.0 }
 0x15d   :  { %v209_v22 = vsel %vm201_vm14, 1.0, %v193_v17  ;;  %vm202_vm15 = vcmp.ne.f32.partialorder %v194_v19, %v194_v19  ;;  %v223_v23 = vmul.f32 %v325_v20, %v222_v15 }
 0x15e   :  { %334 = vrsqrt.f32 %v209_v22  ;;  %v210_v24 = vsel %vm202_vm15, 1.0, %v194_v19  ;;  %v195_v25 = vadd.f32 1e-05, %v187_v21 }
 0x15f   :  { %336 = vrsqrt.f32 %v210_v24  ;;  %v231_v26 = vmul.f32 %v223_v23, %v462_v34 }
 0x160   :  { %v327_v27 = vpop.eup %326  ;;  %vm203_vm1 = vcmp.ne.f32.partialorder %v195_v25, %v195_v25 }
 0x161   :  { %v329_v28 = vpop.eup %328  ;;  %v211_v29 = vsel %vm203_vm1, 1.0, %v195_v25  ;;  %v239_v30 = vmul.f32 1.442695, %v231_v26  ;;  %v224_v31 = vmul.f32 %v327_v27, %v222_v15 }
 0x162   :  { %338 = vrsqrt.f32 %v211_v29  ;;  %v225_v32 = vmul.f32 %v329_v28, %v222_v15 }
 0x163   :  { %340 = vpow2.f32 %v239_v30  ;;  %v232_v33 = vmul.f32 %v224_v31, %v468_v39 }
 0x164   :  { %v331_v36 = vpop.eup %330  ;;  %v233_v37 = vmul.f32 %v225_v32, %v464_v35 }
 0x165   :  { %v333_v38 = vpop.eup %332  ;;  %v241_v41 = vmul.f32 1.442695, %v232_v33  ;;  %v226_v42 = vmul.f32 %v331_v36, %v222_v15 }
 0x166   :  { %v243_v43 = vmul.f32 1.442695, %v233_v37  ;;  %v227_v44 = vmul.f32 %v333_v38, %v222_v15 }
 0x167   :  { %342 = vpow2.f32 %v241_v41  ;;  %v234_v34 = vmul.f32 %v226_v42, %v470_v40 }
 0x168   :  { %v335_v47 = vpop.eup %334  ;;  %344 = vpow2.f32 %v243_v43  ;;  %v235_v48 = vmul.f32 %v227_v44, %v476_v45 }
 0x169   :  { %v337_v49 = vpop.eup %336  ;;  %v245_v50 = vmul.f32 1.442695, %v234_v34  ;;  %v228_v53 = vmul.f32 %v335_v47, %v222_v15 }
 0x16a   :  { %v247_v54 = vmul.f32 1.442695, %v235_v48  ;;  %v229_v39 = vmul.f32 %v337_v49, %v222_v15 }
 0x16b   :  { %346 = vpow2.f32 %v245_v50  ;;  %v236_v35 = vmul.f32 %v228_v53, %v478_v46 }
 0x16c   :  { %v339_v55 = vpop.eup %338  ;;  %348 = vpow2.f32 %v247_v54  ;;  %v237_v56 = vmul.f32 %v229_v39, %v484_v51 }
 0x16d   :  { %v341_v57 = vpop.eup %340  ;;  %v249_v58 = vmul.f32 1.442695, %v236_v35  ;;  %v230_v59 = vmul.f32 %v339_v55, %v222_v15 }
 0x16e   :  { %v255_v40 = vsel %vm59_vm0, %v341_v57, 0.0  ;;  %v251_v60 = vmul.f32 1.442695, %v237_v56 }
 0x16f   :  { %256 = vadd.xlane.f32.xlu0 %v255_v40  ;;  %350 = vpow2.f32 %v249_v58  ;;  %v238_v45 = vmul.f32 %v230_v59, %v486_v52 }
 0x170   :  { %352 = vpow2.f32 %v251_v60 }
 0x171   :  { %v343_v61 = vpop.eup %342  ;;  %v253_v62 = vmul.f32 1.442695, %v238_v45 }
 0x172   :  { %v345_v63 = vpop.eup %344  ;;  %v258_v46 = vsel %vm59_vm0, %v343_v61, 0.0 }
 0x173   :  { %259 = vadd.xlane.f32.xlu1 %v258_v46  ;;  %v261_v0 = vsel %vm59_vm0, %v345_v63, 0.0  ;;  %354 = vpow2.f32 %v253_v62 }
 0x174   :  { %262 = vadd.xlane.f32.xlu0 %v261_v0 }
 0x175   :  { %v347_v51 = vpop.eup %346 }
 0x176   :  { %v349_v1 = vpop.eup %348  ;;  %v264_v2 = vsel %vm59_vm0, %v347_v51, 0.0 }
 0x177   :  { %265 = vadd.xlane.f32.xlu1 %v264_v2  ;;  %v267_v3 = vsel %vm59_vm0, %v349_v1, 0.0 }
 0x178   :  { %268 = vadd.xlane.f32.xlu0 %v267_v3 }
 0x179   :  { %v351_v52 = vpop.eup %350 }
 0x17a   :  { %v353_v4 = vpop.eup %352  ;;  %v270_v5 = vsel %vm59_vm0, %v351_v52, 0.0 }
 0x17b   :  { %271 = vadd.xlane.f32.xlu1 %v270_v5  ;;  %v273_v6 = vsel %vm59_vm0, %v353_v4, 0.0 }
 0x17c   :  { %274 = vadd.xlane.f32.xlu0 %v273_v6 }
 0x17d   :  { %v355_v7 = vpop.eup %354 }
 0x17e   :  { %v276_v8 = vsel %vm59_vm0, %v355_v7, 0.0 }
 0x17f   :  { %277 = vadd.xlane.f32.xlu1 %v276_v8 }
 0x1fc   :  { %v257_v9 = vpop.xlane.xlu0 %256 }
 0x1fd   :  { %356 = vrcp.f32 %v257_v9 }
 0x200   :  { %v260_v10 = vpop.xlane.xlu1 %259 }
 0x201   :  { %358 = vrcp.f32 %v260_v10  ;;  %v263_v11 = vpop.xlane.xlu0 %262 }
 0x202   :  { %360 = vrcp.f32 %v263_v11 }
 0x204   :  { %v266_v12 = vpop.xlane.xlu1 %265 }
 0x205   :  { %362 = vrcp.f32 %v266_v12  ;;  %v269_v13 = vpop.xlane.xlu0 %268 }
 0x206   :  { %364 = vrcp.f32 %v269_v13 }
 0x207   :  { %v357_v14 = vpop.eup %356 }
 0x208   :  { %v280_v15 = vmul.f32 %v357_v14, %v341_v57  ;;  %v272_v16 = vpop.xlane.xlu1 %271 }
 0x209   :  { %366 = vrcp.f32 %v272_v16  ;;  %v275_v17 = vpop.xlane.xlu0 %274 }
 0x20a   :  { %295 = vst.msk [vmem:[#allocation6] sm:$0xff] %vm59_vm0, %v280_v15  ;;  %368 = vrcp.f32 %v275_v17 }
 0x20b   :  { %v359_v18 = vpop.eup %358 }
 0x20c   :  { %v361_v19 = vpop.eup %360  ;;  %v282_v20 = vmul.f32 %v359_v18, %v343_v61  ;;  %v278_v21 = vpop.xlane.xlu1 %277 }
 0x20d   :  { %v284_v22 = vmul.f32 %v361_v19, %v345_v63  ;;  %370 = vrcp.f32 %v278_v21 }
 0x20e   :  { %296 = vst.msk [vmem:[#allocation6 + $0x8] sm:$0xff] %vm59_vm0, %v282_v20 }
 0x20f   :  { %v363_v23 = vpop.eup %362  ;;  %297 = vst.msk [vmem:[#allocation6 + $0x10] sm:$0xff] %vm59_vm0, %v284_v22 }
 0x210   :  { %v365_v24 = vpop.eup %364  ;;  %v286_v25 = vmul.f32 %v363_v23, %v347_v51 }
 0x211   :  { %v288_v26 = vmul.f32 %v365_v24, %v349_v1 }
 0x212   :  { %298 = vst.msk [vmem:[#allocation6 + $0x18] sm:$0xff] %vm59_vm0, %v286_v25 }
 0x213   :  { %v367_v27 = vpop.eup %366  ;;  %299 = vst.msk [vmem:[#allocation6 + $0x20] sm:$0xff] %vm59_vm0, %v288_v26 }
 0x214   :  { %v369_v28 = vpop.eup %368  ;;  %v290_v29 = vmul.f32 %v367_v27, %v351_v52 }
 0x215   :  { %v292_v30 = vmul.f32 %v369_v28, %v353_v4 }
 0x216   :  { %300 = vst.msk [vmem:[#allocation6 + $0x28] sm:$0xff] %vm59_vm0, %v290_v29 }
 0x217   :  { %v371_v31 = vpop.eup %370  ;;  %301 = vst.msk [vmem:[#allocation6 + $0x30] sm:$0xff] %vm59_vm0, %v292_v30 }
 0x218   :  { %v294_v32 = vmul.f32 %v371_v31, %v355_v7 }
 0x21a   :  { %302 = vst.msk [vmem:[#allocation6 + $0x38] sm:$0xff] %vm59_vm0, %v294_v32 }
 0x21b   :  { %405 = shalt.err (!%p402_p12)
}
 0x21c   :  { %s406_s29 = scalar_lea.hbm %s562_s2, 1024 }
 0x21d   :  { %p407_p13 = scmp.ne.s32.totalorder %s562_s2, %s406_s29  ;;  %p410_p0 = scmp.lt.u32.totalorder %s406_s29, %s562_s2 }
 0x21f   :  { %p412_p1 = pnand %p410_p0, %p407_p13 }
 0x221   :  { %415 = shalt.err (!%p412_p1)
}
 0x222   :  { %314 = dma.vmem_to_hbm [thread:$0]  %s309_s25, 1024, %s562_s2, [#allocation5], %s421_s19, %s421_s19, %s422_s20  }
 0x223   :  { %418 = dma.done.wait [#allocation5], 1024  }
 0x224   :  { %419 = vsyncadd [#allocation5], 4294966272 }
 0x225   :  { %318 = vsyncpa [#allocation4], 1 }
 0x226   :  { %319 = vsyncpa [#allocation5], 1 }

</bundles_post_ra>
